<compile_context>
chip_gen: v5e
topology: v5e:2x2
jax: 0.10.0
libtpu: 0.0.40
codegen_flags: <defaults>
</compile_context>

<pallas_src>
import functools

import jax
import jax.numpy as jnp
from jax.experimental import pallas as pl
from jax.experimental.pallas import tpu as pltpu

_VMEM_LIMIT = 32 * 1024 * 1024   # explicit budget; safe on v5e/v6e/v7x


def _conv_stats_kernel(p_ref, w_ref, conv_ref, sum_ref, ssq_ref):
    """Phase 1: fused conv matmul + per-channel sum / sum-of-squares.

    p_ref:    (K, tile_m)    bf16  im2col patches, K = k*k*Cin, M on lanes
    w_ref:    (Cout, K)      bf16  conv weight
    conv_ref: (Cout, tile_m) f32   conv output tile (lane-dense)
    sum_ref:  (Cout, 1)      f32   running per-channel sum     (resident)
    ssq_ref:  (Cout, 1)      f32   running per-channel sum x^2 (resident)
    """
    @pl.when(pl.program_id(0) == 0)
    def _():
        sum_ref[...] = jnp.zeros_like(sum_ref)
        ssq_ref[...] = jnp.zeros_like(ssq_ref)

    # Single MXU matmul per tile, contraction depth K, f32 accumulation.
    acc = jnp.dot(w_ref[...], p_ref[...], preferred_element_type=jnp.float32)
    conv_ref[...] = acc
    # Zero-padded M columns contribute exactly 0 to both statistics.
    sum_ref[...] += jnp.sum(acc, axis=1, keepdims=True)
    ssq_ref[...] += jnp.sum(acc * acc, axis=1, keepdims=True)


def _bn_prelu_kernel(conv_ref, scale_ref, shift_ref, alpha_ref, o_ref):
    """Phase 2: folded BN affine (one FMA per element) + PReLU, lane-dense store."""
    y = conv_ref[...] * scale_ref[...] + shift_ref[...]
    o_ref[...] = jnp.where(y >= 0, y, alpha_ref[...] * y)


def conv_bn_prelu(x_nchw, weight, gamma, beta, alpha, *,
                  stride=1, eps=1e-3, tile_m=512):
    """NCHW in / NCHW out, PyTorch OIHW conv weight, per-channel BN/PReLU params."""
    N, Cin, H, W = x_nchw.shape
    Cout, Cin_w, k, k2 = weight.shape
    assert Cin == Cin_w and k == k2
    p = (k - 1) // 2
    Ho = (H + 2 * p - k) // stride + 1
    Wo = (W + 2 * p - k) // stride + 1
    M = N * Ho * Wo
    K = k * k * Cin

    # ---- wrapper glue: layout + im2col (pure plumbing, stays in XLA) ----
    x = jnp.transpose(x_nchw, (0, 2, 3, 1))                  # NHWC
    x_pad = jnp.pad(x, ((0, 0), (p, p), (p, p), (0, 0)))     # 'same' padding
    hs = (Ho - 1) * stride + 1
    ws = (Wo - 1) * stride + 1
    taps = []
    for kh in range(k):                                      # tap-major, channel-minor
        for kw in range(k):
            taps.append(x_pad[:, kh:kh + hs:stride, kw:kw + ws:stride, :])
    cols = jnp.concatenate(taps, axis=-1)                    # (N, Ho, Wo, K)
    patches = cols.reshape(M, K).astype(jnp.bfloat16).T      # (K, M), M on lanes

    # Tile the M (lane) axis; pad with zero columns so the grid divides evenly.
    tile_m = max(128, (min(tile_m, max(M, 128)) // 128) * 128)
    n_tiles = pl.cdiv(M, tile_m)
    m_pad = n_tiles * tile_m
    patches = jnp.pad(patches, ((0, 0), (0, m_pad - M)))

    # Weight (Cout,Cin,kh,kw) -> (Cout,kh,kw,Cin) -> (Cout,K): matches im2col order.
    w = jnp.transpose(weight, (0, 2, 3, 1)).reshape(Cout, K).astype(jnp.bfloat16)

    # ---- phase 1: conv + global BN statistics ----
    conv, csum, cssq = pl.pallas_call(
        _conv_stats_kernel,
        grid=(n_tiles,),
        in_specs=[
            pl.BlockSpec((K, tile_m), lambda i: (0, i)),
            pl.BlockSpec((Cout, K), lambda i: (0, 0)),
        ],
        out_specs=[
            pl.BlockSpec((Cout, tile_m), lambda i: (0, i)),
            pl.BlockSpec((Cout, 1), lambda i: (0, 0)),        # resident accumulators
            pl.BlockSpec((Cout, 1), lambda i: (0, 0)),
        ],
        out_shape=[
            jax.ShapeDtypeStruct((Cout, m_pad), jnp.float32),
            jax.ShapeDtypeStruct((Cout, 1), jnp.float32),
            jax.ShapeDtypeStruct((Cout, 1), jnp.float32),
        ],
        compiler_params=pltpu.CompilerParams(
            dimension_semantics=("arbitrary",),               # stats carried across tiles
            vmem_limit_bytes=_VMEM_LIMIT),
    )(patches, w)

    # ---- glue: fold BN (batch stats, biased variance) into scale/shift ----
    mean = csum / M
    var = jnp.maximum(cssq / M - mean * mean, 0.0)
    scale = gamma.reshape(Cout, 1).astype(jnp.float32) * jax.lax.rsqrt(var + eps)
    shift = beta.reshape(Cout, 1).astype(jnp.float32) - mean * scale
    a = alpha.reshape(Cout, 1).astype(jnp.float32)

    # ---- phase 2: normalize + PReLU (independent tiles -> parallel/megacore) ----
    y = pl.pallas_call(
        _bn_prelu_kernel,
        grid=(n_tiles,),
        in_specs=[
            pl.BlockSpec((Cout, tile_m), lambda i: (0, i)),
            pl.BlockSpec((Cout, 1), lambda i: (0, 0)),
            pl.BlockSpec((Cout, 1), lambda i: (0, 0)),
            pl.BlockSpec((Cout, 1), lambda i: (0, 0)),
        ],
        out_specs=pl.BlockSpec((Cout, tile_m), lambda i: (0, i)),
        out_shape=jax.ShapeDtypeStruct((Cout, m_pad), jnp.float32),
        compiler_params=pltpu.CompilerParams(
            dimension_semantics=("parallel",),
            vmem_limit_bytes=_VMEM_LIMIT),
    )(conv, scale, shift, a)

    # ---- wrapper glue: back to NCHW ----
    y = y[:, :M].reshape(Cout, N, Ho, Wo)
    return jnp.transpose(y, (1, 0, 2, 3))


def _reference(x_nchw, weight, gamma, beta, alpha, *, stride=1, eps=1e-3):
    """Pure-JAX f32 reference matching the PyTorch forward (training-mode BN)."""
    p = (weight.shape[-1] - 1) // 2
    y = jax.lax.conv_general_dilated(
        x_nchw, weight, window_strides=(stride, stride),
        padding=((p, p), (p, p)),
        dimension_numbers=("NCHW", "OIHW", "NCHW"))
    mean = jnp.mean(y, axis=(0, 2, 3), keepdims=True)
    var = jnp.mean((y - mean) ** 2, axis=(0, 2, 3), keepdims=True)
    yn = (y - mean) * jax.lax.rsqrt(var + eps)
    yn = yn * gamma[None, :, None, None] + beta[None, :, None, None]
    return jnp.where(yn >= 0, yn, alpha[None, :, None, None] * yn)


if __name__ == "__main__":
    # Small shapes consistent with the module: nIn=8, nOut=16, kSize=3.
    N, Cin, H, W = 2, 8, 16, 16
    Cout, k = 16, 3

    key = jax.random.PRNGKey(0)
    kx, kw, kg, kb = jax.random.split(key, 4)
    x = jax.random.normal(kx, (N, Cin, H, W), jnp.float32)
    weight = 0.1 * jax.random.normal(kw, (Cout, Cin, k, k), jnp.float32)
    gamma = 1.0 + 0.1 * jax.random.normal(kg, (Cout,), jnp.float32)
    beta = 0.1 * jax.random.normal(kb, (Cout,), jnp.float32)
    alpha = jnp.full((Cout,), 0.25, jnp.float32)   # PReLU default init

    for stride in (1, 2):
        fn = jax.jit(functools.partial(conv_bn_prelu, stride=stride, eps=1e-3,
                                       tile_m=128))   # small tile -> exercises grid
        out = jax.block_until_ready(fn(x, weight, gamma, beta, alpha))
        ref = _reference(x, weight, gamma, beta, alpha, stride=stride, eps=1e-3)
        assert out.shape == ref.shape
        # bf16 MXU inputs with f32 accumulation -> relaxed tolerance vs f32 reference.
        assert jnp.allclose(out, ref, atol=3e-2, rtol=3e-2), \
            f"mismatch vs reference (stride={stride})"

    print("KERNEL_OK")
</pallas_src>

<mosaic_0001>
module attributes {stable_mosaic.version = 11 : i64} {
  func.func @_conv_stats_kernel(%arg0: i32, %arg1: memref<72x128xbf16, #tpu.memory_space<vmem>>, %arg2: memref<16x72xbf16, #tpu.memory_space<vmem>>, %arg3: memref<16x128xf32, #tpu.memory_space<vmem>>, %arg4: memref<16x1xf32, #tpu.memory_space<vmem>>, %arg5: memref<16x1xf32, #tpu.memory_space<vmem>>) attributes {dimension_semantics = [#tpu.dimension_semantics<arbitrary>], iteration_bounds = array<i64: 4>, scalar_prefetch = 0 : i64, scratch_operands = 0 : i64, tpu.core_type = #tpu.core_type<tc>, window_params = [{transform_indices = @transform_0, window_bounds = array<i64: 72, 128>}, {pipeline_mode = #tpu.pipeline_mode<synchronous>, transform_indices = @transform_1, window_bounds = array<i64: 16, 72>}, {transform_indices = @transform_2, window_bounds = array<i64: 16, 128>}, {pipeline_mode = #tpu.pipeline_mode<synchronous>, transform_indices = @transform_3, window_bounds = array<i64: 16, 1>}, {pipeline_mode = #tpu.pipeline_mode<synchronous>, transform_indices = @transform_4, window_bounds = array<i64: 16, 1>}]} {
    %c0_i32 = arith.constant 0 : i32
    %0 = arith.cmpi eq, %arg0, %c0_i32 : i32
    %1 = arith.extui %0 : i1 to i32
    %c0_i32_0 = arith.constant 0 : i32
    %2 = arith.cmpi ne, %1, %c0_i32_0 : i32
    scf.if %2 {
      %cst_16 = arith.constant 0.000000e+00 : f32
      %18 = vector.broadcast %cst_16 : f32 to vector<16x1xf32>
      %c0_17 = arith.constant 0 : index
      %c0_18 = arith.constant 0 : index
      %19 = vector.load %arg4[%c0_17, %c0_18] : memref<16x1xf32, #tpu.memory_space<vmem>>, vector<16x1xf32>
      tpu.vector_store %arg4[%c0_17, %c0_18], %18 {strides = array<i32>} : memref<16x1xf32, #tpu.memory_space<vmem>>, vector<16x1xf32>,
      %cst_19 = arith.constant 0.000000e+00 : f32
      %20 = vector.broadcast %cst_19 : f32 to vector<16x1xf32>
      %c0_20 = arith.constant 0 : index
      %c0_21 = arith.constant 0 : index
      %21 = vector.load %arg5[%c0_20, %c0_21] : memref<16x1xf32, #tpu.memory_space<vmem>>, vector<16x1xf32>
      tpu.vector_store %arg5[%c0_20, %c0_21], %20 {strides = array<i32>} : memref<16x1xf32, #tpu.memory_space<vmem>>, vector<16x1xf32>,
    } else {
    }
    %c0 = arith.constant 0 : index
    %c0_1 = arith.constant 0 : index
    %3 = vector.load %arg2[%c0, %c0_1] : memref<16x72xbf16, #tpu.memory_space<vmem>>, vector<16x72xbf16>
    %c0_2 = arith.constant 0 : index
    %c0_3 = arith.constant 0 : index
    %4 = vector.load %arg1[%c0_2, %c0_3] : memref<72x128xbf16, #tpu.memory_space<vmem>>, vector<72x128xbf16>
    %cst = arith.constant dense<0.000000e+00> : vector<16x128xf32>
    %5 = tpu.matmul %3, %4, %cst {dimension_numbers = #tpu.dot_dimension_numbers<[1], [0], [0], [1], [0, 0, 1, 1], [], []>} : vector<16x72xbf16>, vector<72x128xbf16>, vector<16x128xf32> -> vector<16x128xf32>
    %c0_4 = arith.constant 0 : index
    %c0_5 = arith.constant 0 : index
    %6 = vector.load %arg3[%c0_4, %c0_5] : memref<16x128xf32, #tpu.memory_space<vmem>>, vector<16x128xf32>
    tpu.vector_store %arg3[%c0_4, %c0_5], %5 {strides = array<i32>} : memref<16x128xf32, #tpu.memory_space<vmem>>, vector<16x128xf32>,
    %c0_6 = arith.constant 0 : index
    %c0_7 = arith.constant 0 : index
    %7 = vector.load %arg4[%c0_6, %c0_7] : memref<16x1xf32, #tpu.memory_space<vmem>>, vector<16x1xf32>
    %cst_8 = arith.constant dense<0.000000e+00> : vector<16xf32>
    %8 = vector.multi_reduction <add>, %5, %cst_8 [1] : vector<16x128xf32> to vector<16xf32>
    %9 = vector.shape_cast %8 : vector<16xf32> to vector<16x1xf32>
    %10 = arith.addf %7, %9 : vector<16x1xf32>
    %c0_9 = arith.constant 0 : index
    %c0_10 = arith.constant 0 : index
    %11 = vector.load %arg4[%c0_9, %c0_10] : memref<16x1xf32, #tpu.memory_space<vmem>>, vector<16x1xf32>
    tpu.vector_store %arg4[%c0_9, %c0_10], %10 {strides = array<i32>} : memref<16x1xf32, #tpu.memory_space<vmem>>, vector<16x1xf32>,
    %c0_11 = arith.constant 0 : index
    %c0_12 = arith.constant 0 : index
    %12 = vector.load %arg5[%c0_11, %c0_12] : memref<16x1xf32, #tpu.memory_space<vmem>>, vector<16x1xf32>
    %13 = arith.mulf %5, %5 : vector<16x128xf32>
    %cst_13 = arith.constant dense<0.000000e+00> : vector<16xf32>
    %14 = vector.multi_reduction <add>, %13, %cst_13 [1] : vector<16x128xf32> to vector<16xf32>
    %15 = vector.shape_cast %14 : vector<16xf32> to vector<16x1xf32>
    %16 = arith.addf %12, %15 : vector<16x1xf32>
    %c0_14 = arith.constant 0 : index
    %c0_15 = arith.constant 0 : index
    %17 = vector.load %arg5[%c0_14, %c0_15] : memref<16x1xf32, #tpu.memory_space<vmem>>, vector<16x1xf32>
    tpu.vector_store %arg5[%c0_14, %c0_15], %16 {strides = array<i32>} : memref<16x1xf32, #tpu.memory_space<vmem>>, vector<16x1xf32>,
    return
  }
  func.func @transform_0(%arg0: i32) -> (i32, i32) {
    %c0_i32 = arith.constant 0 : i32
    %c0_i32_0 = arith.constant 0 : i32
    return %c0_i32, %arg0 : i32, i32
  }
  func.func @transform_1(%arg0: i32) -> (i32, i32) {
    %c0_i32 = arith.constant 0 : i32
    %c0_i32_0 = arith.constant 0 : i32
    %c0_i32_1 = arith.constant 0 : i32
    return %c0_i32, %c0_i32_0 : i32, i32
  }
  func.func @transform_2(%arg0: i32) -> (i32, i32) {
    %c0_i32 = arith.constant 0 : i32
    %c0_i32_0 = arith.constant 0 : i32
    return %c0_i32, %arg0 : i32, i32
  }
  func.func @transform_3(%arg0: i32) -> (i32, i32) {
    %c0_i32 = arith.constant 0 : i32
    %c0_i32_0 = arith.constant 0 : i32
    %c0_i32_1 = arith.constant 0 : i32
    return %c0_i32, %c0_i32_0 : i32, i32
  }
  func.func @transform_4(%arg0: i32) -> (i32, i32) {
    %c0_i32 = arith.constant 0 : i32
    %c0_i32_0 = arith.constant 0 : i32
    %c0_i32_1 = arith.constant 0 : i32
    return %c0_i32, %c0_i32_0 : i32, i32
  }
}

module attributes {stable_mosaic.version = 11 : i64} {
  func.func @_bn_prelu_kernel(%arg0: i32, %arg1: memref<16x128xf32, #tpu.memory_space<vmem>>, %arg2: memref<16x1xf32, #tpu.memory_space<vmem>>, %arg3: memref<16x1xf32, #tpu.memory_space<vmem>>, %arg4: memref<16x1xf32, #tpu.memory_space<vmem>>, %arg5: memref<16x128xf32, #tpu.memory_space<vmem>>) attributes {dimension_semantics = [#tpu.dimension_semantics<parallel>], iteration_bounds = array<i64: 4>, scalar_prefetch = 0 : i64, scratch_operands = 0 : i64, tpu.core_type = #tpu.core_type<tc>, window_params = [{transform_indices = @transform_0, window_bounds = array<i64: 16, 128>}, {pipeline_mode = #tpu.pipeline_mode<synchronous>, transform_indices = @transform_1, window_bounds = array<i64: 16, 1>}, {pipeline_mode = #tpu.pipeline_mode<synchronous>, transform_indices = @transform_2, window_bounds = array<i64: 16, 1>}, {pipeline_mode = #tpu.pipeline_mode<synchronous>, transform_indices = @transform_3, window_bounds = array<i64: 16, 1>}, {transform_indices = @transform_4, window_bounds = array<i64: 16, 128>}]} {
    %c0 = arith.constant 0 : index
    %c0_0 = arith.constant 0 : index
    %0 = vector.load %arg1[%c0, %c0_0] : memref<16x128xf32, #tpu.memory_space<vmem>>, vector<16x128xf32>
    %c0_1 = arith.constant 0 : index
    %c0_2 = arith.constant 0 : index
    %1 = vector.load %arg2[%c0_1, %c0_2] : memref<16x1xf32, #tpu.memory_space<vmem>>, vector<16x1xf32>
    %2 = vector.broadcast %1 : vector<16x1xf32> to vector<16x128xf32>
    %3 = arith.mulf %0, %2 : vector<16x128xf32>
    %c0_3 = arith.constant 0 : index
    %c0_4 = arith.constant 0 : index
    %4 = vector.load %arg3[%c0_3, %c0_4] : memref<16x1xf32, #tpu.memory_space<vmem>>, vector<16x1xf32>
    %5 = vector.broadcast %4 : vector<16x1xf32> to vector<16x128xf32>
    %6 = arith.addf %3, %5 : vector<16x128xf32>
    %cst = arith.constant 0.000000e+00 : f32
    %7 = vector.broadcast %cst : f32 to vector<16x128xf32>
    %8 = arith.cmpf oge, %6, %7 : vector<16x128xf32>
    %c0_5 = arith.constant 0 : index
    %c0_6 = arith.constant 0 : index
    %9 = vector.load %arg4[%c0_5, %c0_6] : memref<16x1xf32, #tpu.memory_space<vmem>>, vector<16x1xf32>
    %10 = vector.broadcast %9 : vector<16x1xf32> to vector<16x128xf32>
    %11 = arith.mulf %10, %6 : vector<16x128xf32>
    %12 = arith.select %8, %6, %11 : vector<16x128xi1>, vector<16x128xf32>
    %c0_7 = arith.constant 0 : index
    %c0_8 = arith.constant 0 : index
    %13 = vector.load %arg5[%c0_7, %c0_8] : memref<16x128xf32, #tpu.memory_space<vmem>>, vector<16x128xf32>
    tpu.vector_store %arg5[%c0_7, %c0_8], %12 {strides = array<i32>} : memref<16x128xf32, #tpu.memory_space<vmem>>, vector<16x128xf32>,
    return
  }
  func.func @transform_0(%arg0: i32) -> (i32, i32) {
    %c0_i32 = arith.constant 0 : i32
    %c0_i32_0 = arith.constant 0 : i32
    return %c0_i32, %arg0 : i32, i32
  }
  func.func @transform_1(%arg0: i32) -> (i32, i32) {
    %c0_i32 = arith.constant 0 : i32
    %c0_i32_0 = arith.constant 0 : i32
    %c0_i32_1 = arith.constant 0 : i32
    return %c0_i32, %c0_i32_0 : i32, i32
  }
  func.func @transform_2(%arg0: i32) -> (i32, i32) {
    %c0_i32 = arith.constant 0 : i32
    %c0_i32_0 = arith.constant 0 : i32
    %c0_i32_1 = arith.constant 0 : i32
    return %c0_i32, %c0_i32_0 : i32, i32
  }
  func.func @transform_3(%arg0: i32) -> (i32, i32) {
    %c0_i32 = arith.constant 0 : i32
    %c0_i32_0 = arith.constant 0 : i32
    %c0_i32_1 = arith.constant 0 : i32
    return %c0_i32, %c0_i32_0 : i32, i32
  }
  func.func @transform_4(%arg0: i32) -> (i32, i32) {
    %c0_i32 = arith.constant 0 : i32
    %c0_i32_0 = arith.constant 0 : i32
    return %c0_i32, %arg0 : i32, i32
  }
}

</mosaic_0001>

<bundles_post_ra>
// kernel: conv_bn_prelu.3
= control target key start
LH: loop header
LB: loop body
LE: loop exit
PB: predicated region body
PF: predicated region fallthrough
CT: control target
= control target key end

     0   :  { %s474_s15 = smov 0   ;;  %s476_s16 = smov 0   ;;  %s552_s0 = inlined_call_operand.vmem [shape: f32[16,512], index: 0, kind: input, shape index: {}]   ;;  %s553_s1 = inlined_call_operand.vmem [shape: f32[16,1], index: 1, kind: input, shape index: {}]   ;;  %s554_s2 = inlined_call_operand.vmem [shape: f32[16,1], index: 2, kind: input, shape index: {}]   ;;  %s555_s3 = inlined_call_operand.vmem [shape: f32[16,1], index: 3, kind: input, shape index: {}]   ;;  %s556_s4 = inlined_call_operand.vmem [shape: f32[16,512], index: 4, kind: output, shape index: {}]  }
   0x1   :  { %s478_s17 = smov 0  }
   0x2 LB: > { %s383_s18 = sadd.s32 4294967295, %s446_s17   ;;  %s491_s19 = sadd.s32 1, %s446_s17   ;;  %s446_s17 = sphi %s478_s17, %s560_s17   ;;  %s442_s16 = sphi %s476_s16, %s559_s16   ;;  %s438_s15 = sphi %s474_s15, %s558_s15  }
   0x3   : > { %s18_s20 = ssub.s32 %s446_s17, %s491_s19  ;;  %s21_s21 = sadd.s32 1, %s442_s16 }
   0x4   : > { %p19_p0 = scmp.eq.s32.totalorder %s18_s20, 0  ;;  %p28_p1 = scmp.ne.s32.totalorder %s442_s16, %s438_s15 }
   0x5   : > { %p29_p2 = scmp.eq.s32.totalorder %s446_s17, 0  ;;  %p121_p3 = scmp.eq.s32.totalorder %s383_s18, 3 }
   0x6   : > { %s502_s22 = scalar_select %p19_p0, %s442_s16, %s21_s21  }
   0x7   : > { %p30_p4 = por %p29_p2, %p28_p1  ;;  %p504_p5 = por %p121_p3, %p28_p1 }
   0x8   : > { %p386_p6 = scmp.ge.s32.totalorder %s446_s17, 4 }
   0xa   : > { %152 = sbr.rel (%p386_p6) target bundleno = 21 (0x15), region = 28 }
   0xf   : > { %155 = sbr.rel (!%p30_p4) target bundleno = 21 (0x15), region = 32  ;;  %s157_s24 = sand.u32 (%p30_p4), 1, %s442_s16  }
  0x10   : > { %s388_s25 = sshll.u32 (%p30_p4), %s446_s17, 3  ;;  %s387_s26 = sshll.u32 (%p30_p4), %s157_s24, 4 }
  0x11   : > { %s161_s29 = scalar_lea.vmem (%p30_p4), %s552_s0, %s388_s25  ;;  %s159_s30 = scalar_lea.vmem (%p30_p4), [#allocation2], %s387_s26 }
  0x12   : > { %v192_v0 = vld [vmem:[%s161_s29] sm:$0xff] (%p30_p4) }
  0x13   : > { %v194_v1 = vld [vmem:[%s161_s29 + $0x20] sm:$0xff] (%p30_p4)  ;;  %193 = vst [vmem:[%s159_s30] sm:$0xff] (%p30_p4), %v192_v0 }
  0x14   : > { %195 = vst [vmem:[%s159_s30 + $0x8] sm:$0xff] %v194_v1 }
  0x15 PF: > { %p389_p7 = scmp.ge.s32.totalorder %s446_s17, 1  ;;  %p200_p8 = scmp.lt.s32.totalorder %s446_s17, 5 }
  0x17   : > { %p201_p9 = pnand %p389_p7, %p200_p8 }
  0x18   : > { %s207_s24 = sand.u32 (!%p201_p9), 1, %s438_s15  }
  0x19   : > { %204 = sbr.rel (%p201_p9) target bundleno = 171 (0xab), region = 70  ;;  %s390_s25 = sshll.u32 (!%p201_p9), %s207_s24, 4 }
  0x1a   : > { %s209_s26 = scalar_lea.vmem (!%p201_p9), [#allocation2], %s390_s25  ;;  %s230_s27 = scalar_lea.vmem (!%p201_p9), [#allocation3], %s390_s25 }
  0x1e   : > { %v247_v2 = vld [vmem:[%s554_s2] sm:$0xff]  ;;  %v448_v4 = vmov 0   ;;  %v248_v6 = vld [vmem:[%s554_s2 + $0x8] sm:$0xff]  ;;  %s393_s15 = sshll.u32 (%p504_p5), %s383_s18, 3 }
  0x1f   : > { %v233_v3 = vld [vmem:[%s553_s1] sm:$0xff]  ;;  %422 = vset.pattern.permute.xlu1 %v448_v4  ;;  %421 = vset.pattern.permute.xlu0 %v448_v4  ;;  %v234_v7 = vld [vmem:[%s553_s1 + $0x8] sm:$0xff]  ;;  %s289_s30 = scalar_lea.vmem (%p504_p5), %s556_s4, %s393_s15 }
  0x20   : > { %v263_v5 = vld [vmem:[%s555_s3] sm:$0xff]  ;;  %251 = vperm.xlu1 %422, %v247_v2   ;;  %237 = vperm.xlu0 %421, %v233_v3   ;;  %v264_v8 = vld [vmem:[%s555_s3 + $0x8] sm:$0xff] }
  0x21   : > { %423 = vset.pattern.permute.xlu2 %v448_v4  ;;  %v231_v9 = vld [vmem:[%s209_s26] sm:$0xff]  ;;  %v232_v16 = vld [vmem:[%s209_s26 + $0x8] sm:$0xff] }
  0x22   : > { %267 = vperm.xlu2 %423, %v263_v5  }
  0x28   : > { %256 = vperm.xlu1 %422, %v248_v6   ;;  %242 = vperm.xlu0 %421, %v234_v7  }
  0x2a   : > { %272 = vperm.xlu2 %423, %v264_v8  }
  0x7c   : > { %v268_v13 = vpop.permute.xlu2 %267 }
  0x84   : > { %v273_v22 = vpop.permute.xlu2 %272 }
  0x92   : > { %v252_v10 = vpop.permute.xlu1 %251  ;;  %v238_v11 = vpop.permute.xlu0 %237 }
  0x93   : > { %v245_v12 = vmul.f32 %v238_v11, %v231_v9 }
  0x95   : > { %v259_v14 = vadd.f32 %v252_v10, %v245_v12 }
  0x97   : > { %vm261_vm0 = vcmp.ge.f32.partialorder %v259_v14, 0.0  ;;  %v275_v15 = vmul.f32 %v268_v13, %v259_v14 }
  0x99   : > { %v277_v17 = vsel %vm261_vm0, %v259_v14, %v275_v15 }
  0x9a   : > { %279 = vst [vmem:[%s230_s27] sm:$0xff] %v277_v17  ;;  %v243_v18 = vpop.permute.xlu0 %242  ;;  %v257_v20 = vpop.permute.xlu1 %256 }
  0x9b   : > { %v246_v19 = vmul.f32 %v243_v18, %v232_v16 }
  0x9d   : > { %v260_v21 = vadd.f32 %v257_v20, %v246_v19 }
  0x9e   : > { %287 = sbr.rel (!%p504_p5) target bundleno = 171 (0xab), region = 78 }
  0x9f   : > { %vm262_vm1 = vcmp.ge.f32.partialorder %v260_v21, 0.0  ;;  %v276_v23 = vmul.f32 %v273_v22, %v260_v21 }
  0xa1   : > { %v278_v24 = vsel %vm262_vm1, %v260_v21, %v276_v23  ;;  %v320_v25 = vld [vmem:[%s230_s27] sm:$0xff] (%p504_p5) }
  0xa2   : > { %280 = vst [vmem:[%s230_s27 + $0x8] sm:$0xff] %v278_v24 }
  0xa3   : > { %321 = vst [vmem:[%s289_s30] sm:$0xff] %v320_v25 }
  0xa9   : > { %v322_v26 = vld [vmem:[%s230_s27 + $0x8] sm:$0xff] }
  0xaa   : > { %323 = vst [vmem:[%s289_s30 + $0x20] sm:$0xff] %v322_v26 }
  0xab PF: > { %p11_p10 = scmp.ge.s32.totalorder %s491_s19, 6   ;;  %s558_s15 = smov %s442_s16 }
  0xac   : > { %s559_s16 = smov %s502_s22  ;;  %s560_s17 = smov %s491_s19 }
  0xad   :  { %13 = sbr.rel (!%p11_p10) target bundleno = 2 (0x2), region = 147 }

// kernel: conv_bn_prelu.2
= control target key start
LH: loop header
LB: loop body
LE: loop exit
PB: predicated region body
PF: predicated region fallthrough
CT: control target
= control target key end

     0   :  { %s591_s15 = smov 0   ;;  %s593_s16 = smov 0   ;;  %s697_s0 = inlined_call_operand.vmem [shape: bf16[72,512], index: 0, kind: input, shape index: {}]   ;;  %s698_s1 = inlined_call_operand.vmem [shape: bf16[16,72], index: 1, kind: input, shape index: {}]   ;;  %s699_s2 = inlined_call_operand.vmem [shape: f32[16,512], index: 2, kind: output, shape index: {0}]   ;;  %s700_s3 = inlined_call_operand.vmem [shape: f32[16,1], index: 3, kind: output, shape index: {1}]   ;;  %s701_s4 = inlined_call_operand.vmem [shape: f32[16,1], index: 4, kind: output, shape index: {2}]  }
   0x1   :  { %s595_s17 = smov 0  }
   0x2 LB: > { %s607_s18 = sadd.s32 4294967295, %s563_s17   ;;  %s610_s19 = sadd.s32 1, %s563_s17   ;;  %s563_s17 = sphi %s595_s17, %s705_s17   ;;  %s559_s16 = sphi %s593_s16, %s704_s16   ;;  %s555_s15 = sphi %s591_s15, %s703_s15  }
   0x3   : > { %s19_s20 = ssub.s32 %s563_s17, %s610_s19  ;;  %s22_s21 = sadd.s32 1, %s559_s16 }
   0x4   : > { %p20_p0 = scmp.eq.s32.totalorder %s19_s20, 0  ;;  %p29_p1 = scmp.ne.s32.totalorder %s559_s16, %s555_s15 }
   0x5   : > { %p30_p2 = scmp.eq.s32.totalorder %s563_s17, 0  ;;  %p80_p3 = scmp.eq.s32.totalorder %s607_s18, 3 }
   0x6   : > { %s620_s22 = scalar_select %p20_p0, %s559_s16, %s22_s21  }
   0x7   : > { %p31_p4 = por %p30_p2, %p29_p1  ;;  %p622_p5 = por %p80_p3, %p29_p1 }
   0x8   : > { %p479_p6 = scmp.ge.s32.totalorder %s563_s17, 4 }
   0xa   : > { %147 = sbr.rel (%p479_p6) target bundleno = 28 (0x1c), region = 20 }
   0xf   : > { %150 = sbr.rel (!%p31_p4) target bundleno = 28 (0x1c), region = 24  ;;  %s152_s24 = sand.u32 (%p31_p4), 1, %s559_s16  }
  0x10   : > { %s480_s25 = sshll.u32 (%p31_p4), %s563_s17, 2  ;;  %s514_s26 = smul.u32 (%p31_p4), 36, %s152_s24 }
  0x11   : > { %s156_s29 = scalar_lea.vmem (%p31_p4), %s697_s0, %s480_s25 }
  0x12   : > { %v173_v0 = vld [vmem:[%s156_s29] sm:$0xf] (%p31_p4)  ;;  %v175_v1 = vld [vmem:[%s156_s29 + $0x10] sm:$0xf] (%p31_p4)  ;;  %s154_s30 = scalar_lea.vmem (%p31_p4), [#allocation2], %s514_s26 }
  0x13   : > { %v177_v2 = vld [vmem:[%s156_s29 + $0x20] sm:$0xf] (%p31_p4)  ;;  %174 = vst [vmem:[%s154_s30] sm:$0xf] (%p31_p4), %v173_v0  ;;  %v179_v3 = vld [vmem:[%s156_s29 + $0x30] sm:$0xf] (%p31_p4) }
  0x14   : > { %176 = vst [vmem:[%s154_s30 + $0x4] sm:$0xf] %v175_v1  ;;  %v181_v4 = vld [vmem:[%s156_s29 + $0x40] sm:$0xf]  ;;  %v183_v5 = vld [vmem:[%s156_s29 + $0x50] sm:$0xf] }
  0x15   : > { %178 = vst [vmem:[%s154_s30 + $0x8] sm:$0xf] %v177_v2  ;;  %v185_v6 = vld [vmem:[%s156_s29 + $0x60] sm:$0xf]  ;;  %v187_v7 = vld [vmem:[%s156_s29 + $0x70] sm:$0xf] }
  0x16   : > { %180 = vst [vmem:[%s154_s30 + $0xc] sm:$0xf] %v179_v3  ;;  %v189_v8 = vld [vmem:[%s156_s29 + $0x80] sm:$0xf] }
  0x17   : > { %182 = vst [vmem:[%s154_s30 + $0x10] sm:$0xf] %v181_v4 }
  0x18   : > { %184 = vst [vmem:[%s154_s30 + $0x14] sm:$0xf] %v183_v5 }
  0x19   : > { %186 = vst [vmem:[%s154_s30 + $0x18] sm:$0xf] %v185_v6 }
  0x1a   : > { %188 = vst [vmem:[%s154_s30 + $0x1c] sm:$0xf] %v187_v7 }
  0x1b   : > { %190 = vst [vmem:[%s154_s30 + $0x20] sm:$0xf] %v189_v8 }
  0x1c PF: > { %p481_p7 = scmp.ge.s32.totalorder %s563_s17, 1  ;;  %p231_p8 = scmp.lt.s32.totalorder %s563_s17, 5 }
  0x1e   : > { %p232_p9 = pnand %p481_p7, %p231_p8 }
  0x1f   : > { %s238_s5 = sand.u32 (!%p232_p9), 1, %s555_s15   ;;  %p483_p10 = scmp.ne.s32.totalorder (!%p232_p9), %s607_s18, 0 }
  0x20   : > { %235 = sbr.rel (%p232_p9) target bundleno = 327 (0x147), region = 65  ;;  %s482_s7 = sshll.u32 (!%p232_p9), %s238_s5, 4 }
  0x21   : > { %s515_s6 = smul.u32 (!%p232_p9), 36, %s238_s5  ;;  %s635_s9 = scalar_lea.vmem (!%p232_p9), [#allocation3], %s482_s7 }
  0x23   : > { %s240_s8 = scalar_lea.vmem (!%p232_p9), [#allocation2], %s515_s6 }
  0x25   : > { %266 = sbr.rel (%p483_p10) target bundleno = 47 (0x2f), region = 73 }
  0x2a   : > { %vm267_vm0 = vcmask 7168   ;;  %v565_v9 = vmov 0.0  }
  0x2b   : > { %268 = vst.msk [vmem:[%s700_s3] sm:$0xff] %vm267_vm0, %v565_v9 }
  0x2c   : > { %269 = vst.msk [vmem:[%s700_s3 + $0x8] sm:$0xff] %vm267_vm0, %v565_v9 }
  0x2d   : > { %270 = vst.msk [vmem:[%s701_s4] sm:$0xff] %vm267_vm0, %v565_v9 }
  0x2e   : > { %271 = vst.msk [vmem:[%s701_s4 + $0x8] sm:$0xff] %vm267_vm0, %v565_v9 }
  0x2f PF: > { %v282_v10 = vld [vmem:[%s240_s8 + $0x20] sm:$0xf]  ;;  %vm319_vm1 = vcmask 1043456   ;;  %v513_v14 = vld [vmem:[%s240_s8 + $0x18] sm:$0xff]  ;;  %v512_v15 = vld [vmem:[%s240_s8 + $0x10] sm:$0xff]  ;;  %vm315_vm2 = vcmask 588800  }
  0x30   : > { %v305_v11 = vunpack.c.l.b16 %v282_v10  ;;  %v511_v16 = vld [vmem:[%s240_s8 + $0x8] sm:$0xff]  ;;  %v510_v17 = vld [vmem:[%s240_s8] sm:$0xff]  ;;  %vm347_vm3 = vcmask 7168   ;;  %s506_s17 = sshll.u32 (%p622_p5), %s607_s18, 3 }
  0x31   : > { %v509_v18 = vld [vmem:[%s698_s1] sm:$0xff]  ;;  %s370_s24 = scalar_lea.vmem (%p622_p5), %s699_s2, %s506_s17 }
  0x32   : > { %v310_v12 = vpack.c.b16 %v305_v11, %v305_v11  ;;  %v339_v23 = vld [vmem:[%s700_s3] sm:$0xff] }
  0x33   : > { %v340_v29 = vld [vmem:[%s700_s3 + $0x8] sm:$0xff] }
  0x34   : > { %v321_v13 = vsel %vm319_vm1, %v310_v12, 0  ;;  %v350_v25 = vld [vmem:[%s701_s4] sm:$0xff] }
  0x35   : > { %326 = vmatpush.bf16.msra.mxu0 %v321_v13  ;;  %v351_v31 = vld [vmem:[%s701_s4 + $0x8] sm:$0xff] }
  0x39   : > { %327 = vmatpush.bf16.msra.mxu0 %v513_v14 }
  0x3d   : > { %328 = vmatpush.bf16.msra.mxu0 %v512_v15 }
  0x41   : > { %329 = vmatpush.bf16.msra.mxu0 %v511_v16 }
  0x45   : > { %330 = vmatpush.bf16.msra.mxu0 %v510_v17 }
  0x48   : > { %504 = vmatmul.msk.bf16.vlgmr.msra.gmra.mxu0 %vm315_vm2, %v509_v18 }
  0xc5   : > { %v332_v19 = vpop.f32.mrf.mxu0 }
  0xc6   : > { %337 = vst [vmem:[%s635_s9] sm:$0xff] %v332_v19  ;;  %341 = vadd.xlane.f32.xlu0 %v332_v19  ;;  %v352_v20 = vmul.f32 %v332_v19, %v332_v19 }
  0xc8   : > { %354 = vadd.xlane.f32.xlu1 %v352_v20 }
  0xcd   : > { %v334_v21 = vpop.f32.mrf.mxu0  ;;  %v401_v35 = vld [vmem:[%s635_s9] sm:$0xff] (%p622_p5) }
  0xce   : > { %338 = vst [vmem:[%s635_s9 + $0x8] sm:$0xff] %v334_v21  ;;  %343 = vadd.xlane.f32.xlu0 %v334_v21  ;;  %v353_v22 = vmul.f32 %v334_v21, %v334_v21 }
  0xcf   : > { %402 = vst [vmem:[%s370_s24] sm:$0xff] (%p622_p5), %v401_v35 }
  0xd0   : > { %356 = vadd.xlane.f32.xlu1 %v353_v22 }
  0xd5   : > { %v403_v36 = vld [vmem:[%s635_s9 + $0x8] sm:$0xff] (%p622_p5) }
  0xd6   : > { %404 = vst [vmem:[%s370_s24 + $0x20] sm:$0xff] (%p622_p5), %v403_v36 }
 0x139   : > { %v342_v24 = vpop.xlane.xlu0 %341 }
 0x13a   : > { %v345_v26 = vadd.f32 %v342_v24, %v339_v23 }
 0x13b   : > { %v355_v27 = vpop.xlane.xlu1 %354 }
 0x13c   : > { %348 = vst.msk [vmem:[%s700_s3] sm:$0xff] %vm347_vm3, %v345_v26  ;;  %v358_v28 = vadd.f32 %v355_v27, %v350_v25 }
 0x13e   : > { %360 = vst.msk [vmem:[%s701_s4] sm:$0xff] %vm347_vm3, %v358_v28 }
 0x141   : > { %v344_v30 = vpop.xlane.xlu0 %343 }
 0x142   : > { %v346_v32 = vadd.f32 %v344_v30, %v340_v29  ;;  %368 = sbr.rel (!%p622_p5) target bundleno = 327 (0x147), region = 77 }
 0x143   : > { %v357_v33 = vpop.xlane.xlu1 %356 }
 0x144   : > { %349 = vst.msk [vmem:[%s700_s3 + $0x8] sm:$0xff] %vm347_vm3, %v346_v32  ;;  %v359_v34 = vadd.f32 %v357_v33, %v351_v31 }
 0x146   : > { %361 = vst.msk [vmem:[%s701_s4 + $0x8] sm:$0xff] %vm347_vm3, %v359_v34 }
 0x147 PF: > { %p12_p11 = scmp.ge.s32.totalorder %s610_s19, 6   ;;  %s703_s15 = smov %s559_s16 }
 0x148   : > { %s704_s16 = smov %s620_s22  ;;  %s705_s17 = smov %s610_s19 }
 0x149   :  { %14 = sbr.rel (!%p12_p11) target bundleno = 2 (0x2), region = 162 }

</bundles_post_ra>
